<compile_context>
chip_gen: v7x
topology: tpu7x:2x2x1
jax: 0.10.0
libtpu: 0.0.40
codegen_flags: <defaults>
</compile_context>

<pallas_src>
import jax
import jax.numpy as jnp
from jax.experimental import pallas as pl
from jax.experimental.pallas import tpu as pltpu


def _pack_slab(blocks, width):
    """Stack 2-D blocks into one (rows, width) f32 slab.

    Each block starts at a multiple-of-8 row offset (sublane-tile aligned, so
    in-kernel static slices never straddle a tile boundary) and is zero-padded
    to `width` columns. Returns (slab, per-block row offsets).
    """
    parts, offsets, row = [], [], 0
    for blk in blocks:
        r, c = blk.shape
        rp = ((r + 7) // 8) * 8
        parts.append(jnp.pad(blk.astype(jnp.float32),
                             ((0, rp - r), (0, width - c))))
        offsets.append(row)
        row += rp
    return jnp.concatenate(parts, axis=0), tuple(offsets)


def _make_kernel(B, Np, in_c, F, C, offs):
    o_w1, o_b1, o_w2, o_b2, o_wlin, o_blin, o_wct, o_bc = offs

    def kernel(maskbd_ref, x_ref, slab_ref, out_ref):
        # Block-diagonal (I + mask^T), bf16 in HBM -> f32 for the MXU.
        A = maskbd_ref[...].astype(jnp.float32)                 # (B*Np, B*Np)
        x = x_ref[...]                                          # (B*Np, in_c)

        # Static, tile-aligned slices of the packed weight slab (one DMA).
        w1t = slab_ref[o_w1:o_w1 + in_c, :]                     # (in_c, F)
        b1 = slab_ref[o_b1:o_b1 + 1, :]                         # (1, F)
        w2t = slab_ref[o_w2:o_w2 + F, :]                        # (F, F)
        b2 = slab_ref[o_b2:o_b2 + 1, :]                         # (1, F)
        wlin = slab_ref[o_wlin:o_wlin + 1, :]                   # (1, F)
        blin = slab_ref[o_blin:o_blin + 1, 0:1]                 # (1, 1)
        wct = slab_ref[o_wct:o_wct + Np, :]                     # (Np, F), cols>=C zero
        bc = slab_ref[o_bc:o_bc + 1, :]                         # (1, F), cols>=C zero

        # --- GINConv 1: relu(Linear1((I + mask^T) @ x))  (eps=0, dropout=id) ---
        h = jnp.dot(A, x, preferred_element_type=jnp.float32)              # (M, in_c)
        h = jnp.maximum(
            jnp.dot(h, w1t, preferred_element_type=jnp.float32) + b1, 0.0)  # (M, F)

        # --- GINConv 2: relu(Linear2((I + mask^T) @ h)) ---
        h = jnp.dot(A, h, preferred_element_type=jnp.float32)               # (M, F)
        h = jnp.maximum(
            jnp.dot(h, w2t, preferred_element_type=jnp.float32) + b2, 0.0)  # (M, F)

        # --- lin (F -> 1) as VPU multiply + lane reduction, then relu ---
        z = (h * wlin).reshape(B, Np, F)                        # tile-aligned split
        s = jnp.maximum(jnp.sum(z, axis=-1) + blin, 0.0)        # (B, Np)

        # --- Conv1d(N -> C, k=1): padded node rows of wct are zero => exact ---
        out = jnp.dot(s, wct, preferred_element_type=jnp.float32) + bc      # (B, F)
        out_ref[...] = out[:, :C]

    return kernel


def ginnet_forward(real, graph, params):
    """real: (B, N, in_c) float32; graph: (B, K, N, N) complex64."""
    B, N, in_c = real.shape
    w1, b1, w2, b2, wlin, blin, wc, bc = params
    F_ = w1.shape[0]
    C = wc.shape[0]
    assert C <= F_, "weight-slab packing assumes num_classes <= num_filter"

    # Pad node axis to the 8-sublane granule (30 -> 32).
    Np = ((N + 7) // 8) * 8
    pad_n = Np - N
    M = B * Np

    # ---- host-side glue (XLA): mask, +I fold, block-diag batching, packing ----
    adj = jnp.mean(jnp.real(graph), axis=1)                            # (B, N, N)
    mask_t = (adj != 0.0).astype(jnp.float32).transpose(0, 2, 1)       # mask^T
    A = mask_t + jnp.eye(N, dtype=jnp.float32)[None]                   # fold GIN self-term
    A = jnp.pad(A, ((0, 0), (0, pad_n), (0, pad_n)))                   # (B, Np, Np)
    # Block-diagonal batched adjacency (same graph PyG's Batch builds).
    # Entries are {0, 1, 2} -> exact in bf16; halves the mask DMA bytes.
    A_bd = (jnp.einsum('bc,bij->bicj', jnp.eye(B, dtype=jnp.float32), A)
            .reshape(M, M).astype(jnp.bfloat16))

    # Node features already flattened to the (B*Np, in_c) layout the kernel uses.
    x = jnp.pad(real.astype(jnp.float32),
                ((0, 0), (0, pad_n), (0, 0))).reshape(M, in_c)

    # Conv1d(30 -> C, k=1) weight as (N, C), node-padded with ZERO rows.
    # NOTE: padded activation rows carry relu(b1)/relu(b2); correctness relies
    # on these rows staying zero. Do not change this padding.
    wct = jnp.pad(wc.astype(jnp.float32).reshape(C, N).T, ((0, pad_n), (0, 0)))

    slab, offs = _pack_slab(
        [w1.astype(jnp.float32).T,        # (in_c, F)
         b1.reshape(1, F_),
         w2.astype(jnp.float32).T,        # (F, F)
         b2.reshape(1, F_),
         wlin.reshape(1, F_),
         blin.reshape(1, 1),
         wct,                             # (Np, C)
         bc.reshape(1, C)],
        width=F_)
    Rs = slab.shape[0]

    kernel = _make_kernel(B, Np, in_c, F_, C, offs)

    out = pl.pallas_call(
        kernel,
        out_shape=jax.ShapeDtypeStruct((B, C), jnp.float32),
        grid=(1,),
        in_specs=[
            pl.BlockSpec((M, M), lambda i: (0, 0)),        # block-diag (I + mask^T), bf16
            pl.BlockSpec((M, in_c), lambda i: (0, 0)),     # flat node features
            pl.BlockSpec((Rs, F_), lambda i: (0, 0)),      # packed weight/bias slab
        ],
        out_specs=pl.BlockSpec((B, C), lambda i: (0, 0)),
        compiler_params=pltpu.CompilerParams(
            dimension_semantics=("arbitrary",)),
    )(A_bd, x, slab)
    return out


def _reference(real, graph, params):
    w1, b1, w2, b2, wlin, blin, wc, bc = params
    adj = jnp.mean(jnp.real(graph), axis=1)
    mask = (adj != 0.0).astype(jnp.float32)            # (B, N, N)
    x = real
    h = x + jnp.einsum('bji,bjc->bic', mask, x)
    h = jnp.maximum(jnp.einsum('bnc,fc->bnf', h, w1) + b1, 0.0)
    h = h + jnp.einsum('bji,bjc->bic', mask, h)
    h = jnp.maximum(jnp.einsum('bnc,fc->bnf', h, w2) + b2, 0.0)
    s = jnp.maximum(jnp.einsum('bnf,of->bno', h, wlin) + blin, 0.0)[..., 0]  # (B, N)
    out = jnp.einsum('bn,cn->bc', s, wc.reshape(wc.shape[0], -1)) + bc
    return out


if __name__ == "__main__":
    key = jax.random.PRNGKey(0)
    B, N, in_c = 2, 30, 4        # N=30 forced by nn.Conv1d(30, num_classes, 1)
    K = 2                        # graph "channels" averaged over in forward
    num_filter, num_classes = 32, 4

    ks = jax.random.split(key, 12)
    real = jax.random.normal(ks[0], (B, N, in_c), dtype=jnp.float32)

    # complex graph with a nontrivial sparsity pattern
    pattern = (jax.random.uniform(ks[1], (B, 1, N, N)) < 0.3).astype(jnp.float32)
    graph = (jax.random.normal(ks[2], (B, K, N, N))
             + 1j * jax.random.normal(ks[3], (B, K, N, N))) * pattern
    graph = graph.astype(jnp.complex64)

    # deterministic synthetic parameters (shapes match the torch module)
    w1 = 0.1 * jax.random.normal(ks[4], (num_filter, in_c), dtype=jnp.float32)
    b1 = 0.1 * jax.random.normal(ks[5], (num_filter,), dtype=jnp.float32)
    w2 = 0.1 * jax.random.normal(ks[6], (num_filter, num_filter), dtype=jnp.float32)
    b2 = 0.1 * jax.random.normal(ks[7], (num_filter,), dtype=jnp.float32)
    wlin = 0.1 * jax.random.normal(ks[8], (1, num_filter), dtype=jnp.float32)
    blin = 0.1 * jax.random.normal(ks[9], (1,), dtype=jnp.float32)
    wc = 0.1 * jax.random.normal(ks[10], (num_classes, N, 1), dtype=jnp.float32)
    bc = 0.1 * jax.random.normal(ks[11], (num_classes,), dtype=jnp.float32)

    params = (w1, b1, w2, b2, wlin, blin, wc, bc)

    out = ginnet_forward(real, graph, params)
    out = jax.block_until_ready(out)

    ref = _reference(real, graph, params)
    assert out.shape == (B, num_classes)
    assert jnp.allclose(out, ref, atol=1e-3, rtol=1e-3), "mismatch vs reference"

    print("KERNEL_OK")
</pallas_src>

<mosaic_0001>
module attributes {stable_mosaic.version = 11 : i64} {
  func.func @kernel(%arg0: i32, %arg1: memref<64x64xbf16, #tpu.memory_space<vmem>>, %arg2: memref<64x4xf32, #tpu.memory_space<vmem>>, %arg3: memref<112x32xf32, #tpu.memory_space<vmem>>, %arg4: memref<2x4xf32, #tpu.memory_space<vmem>>) attributes {dimension_semantics = [#tpu.dimension_semantics<arbitrary>], iteration_bounds = array<i64: 1>, scalar_prefetch = 0 : i64, scratch_operands = 0 : i64, tpu.core_type = #tpu.core_type<tc>, window_params = [{pipeline_mode = #tpu.pipeline_mode<synchronous>, transform_indices = @transform_0, window_bounds = array<i64: 64, 64>}, {pipeline_mode = #tpu.pipeline_mode<synchronous>, transform_indices = @transform_1, window_bounds = array<i64: 64, 4>}, {pipeline_mode = #tpu.pipeline_mode<synchronous>, transform_indices = @transform_2, window_bounds = array<i64: 112, 32>}, {pipeline_mode = #tpu.pipeline_mode<synchronous>, transform_indices = @transform_3, window_bounds = array<i64: 2, 4>}]} {
    %c0 = arith.constant 0 : index
    %c0_0 = arith.constant 0 : index
    %0 = vector.load %arg1[%c0, %c0_0] : memref<64x64xbf16, #tpu.memory_space<vmem>>, vector<64x64xbf16>
    %1 = arith.extf %0 : vector<64x64xbf16> to vector<64x64xf32>
    %c0_1 = arith.constant 0 : index
    %c0_2 = arith.constant 0 : index
    %2 = vector.load %arg2[%c0_1, %c0_2] : memref<64x4xf32, #tpu.memory_space<vmem>>, vector<64x4xf32>
    %c0_3 = arith.constant 0 : index
    %c0_4 = arith.constant 0 : index
    %3 = vector.load %arg3[%c0_3, %c0_4] : memref<112x32xf32, #tpu.memory_space<vmem>>, vector<4x32xf32>
    %c8 = arith.constant 8 : index
    %c0_5 = arith.constant 0 : index
    %4 = vector.load %arg3[%c8, %c0_5] : memref<112x32xf32, #tpu.memory_space<vmem>>, vector<1x32xf32>
    %c16 = arith.constant 16 : index
    %c0_6 = arith.constant 0 : index
    %5 = vector.load %arg3[%c16, %c0_6] : memref<112x32xf32, #tpu.memory_space<vmem>>, vector<32x32xf32>
    %c48 = arith.constant 48 : index
    %c0_7 = arith.constant 0 : index
    %6 = vector.load %arg3[%c48, %c0_7] : memref<112x32xf32, #tpu.memory_space<vmem>>, vector<1x32xf32>
    %c56 = arith.constant 56 : index
    %c0_8 = arith.constant 0 : index
    %7 = vector.load %arg3[%c56, %c0_8] : memref<112x32xf32, #tpu.memory_space<vmem>>, vector<1x32xf32>
    %c64 = arith.constant 64 : index
    %c0_9 = arith.constant 0 : index
    %8 = vector.load %arg3[%c64, %c0_9] : memref<112x32xf32, #tpu.memory_space<vmem>>, vector<1x1xf32>
    %c72 = arith.constant 72 : index
    %c0_10 = arith.constant 0 : index
    %9 = vector.load %arg3[%c72, %c0_10] : memref<112x32xf32, #tpu.memory_space<vmem>>, vector<32x32xf32>
    %c104 = arith.constant 104 : index
    %c0_11 = arith.constant 0 : index
    %10 = vector.load %arg3[%c104, %c0_11] : memref<112x32xf32, #tpu.memory_space<vmem>>, vector<1x32xf32>
    %cst = arith.constant dense<0.000000e+00> : vector<64x4xf32>
    %11 = tpu.matmul %1, %2, %cst {dimension_numbers = #tpu.dot_dimension_numbers<[1], [0], [0], [1], [0, 0, 1, 1], [], []>} : vector<64x64xf32>, vector<64x4xf32>, vector<64x4xf32> -> vector<64x4xf32>
    %cst_12 = arith.constant dense<0.000000e+00> : vector<64x32xf32>
    %12 = tpu.matmul %11, %3, %cst_12 {dimension_numbers = #tpu.dot_dimension_numbers<[1], [0], [0], [1], [0, 0, 1, 1], [], []>} : vector<64x4xf32>, vector<4x32xf32>, vector<64x32xf32> -> vector<64x32xf32>
    %13 = vector.broadcast %4 : vector<1x32xf32> to vector<64x32xf32>
    %14 = arith.addf %12, %13 : vector<64x32xf32>
    %cst_13 = arith.constant 0.000000e+00 : f32
    %15 = vector.broadcast %cst_13 : f32 to vector<64x32xf32>
    %16 = arith.maximumf %14, %15 : vector<64x32xf32>
    %cst_14 = arith.constant dense<0.000000e+00> : vector<64x32xf32>
    %17 = tpu.matmul %1, %16, %cst_14 {dimension_numbers = #tpu.dot_dimension_numbers<[1], [0], [0], [1], [0, 0, 1, 1], [], []>} : vector<64x64xf32>, vector<64x32xf32>, vector<64x32xf32> -> vector<64x32xf32>
    %cst_15 = arith.constant dense<0.000000e+00> : vector<64x32xf32>
    %18 = tpu.matmul %17, %5, %cst_15 {dimension_numbers = #tpu.dot_dimension_numbers<[1], [0], [0], [1], [0, 0, 1, 1], [], []>} : vector<64x32xf32>, vector<32x32xf32>, vector<64x32xf32> -> vector<64x32xf32>
    %19 = vector.broadcast %6 : vector<1x32xf32> to vector<64x32xf32>
    %20 = arith.addf %18, %19 : vector<64x32xf32>
    %cst_16 = arith.constant 0.000000e+00 : f32
    %21 = vector.broadcast %cst_16 : f32 to vector<64x32xf32>
    %22 = arith.maximumf %20, %21 : vector<64x32xf32>
    %23 = vector.broadcast %7 : vector<1x32xf32> to vector<64x32xf32>
    %24 = arith.mulf %22, %23 : vector<64x32xf32>
    %25 = vector.shape_cast %24 : vector<64x32xf32> to vector<2x32x32xf32>
    %cst_17 = arith.constant dense<0.000000e+00> : vector<2x32xf32>
    %26 = vector.multi_reduction <add>, %25, %cst_17 [2] : vector<2x32x32xf32> to vector<2x32xf32>
    %27 = vector.broadcast %8 : vector<1x1xf32> to vector<2x32xf32>
    %28 = arith.addf %26, %27 : vector<2x32xf32>
    %cst_18 = arith.constant 0.000000e+00 : f32
    %29 = vector.broadcast %cst_18 : f32 to vector<2x32xf32>
    %30 = arith.maximumf %28, %29 : vector<2x32xf32>
    %cst_19 = arith.constant dense<0.000000e+00> : vector<2x32xf32>
    %31 = tpu.matmul %30, %9, %cst_19 {dimension_numbers = #tpu.dot_dimension_numbers<[1], [0], [0], [1], [0, 0, 1, 1], [], []>} : vector<2x32xf32>, vector<32x32xf32>, vector<2x32xf32> -> vector<2x32xf32>
    %32 = vector.broadcast %10 : vector<1x32xf32> to vector<2x32xf32>
    %33 = arith.addf %31, %32 : vector<2x32xf32>
    %34 = vector.extract_strided_slice %33 {offsets = [0, 0], sizes = [2, 4], strides = [1, 1]} : vector<2x32xf32> to vector<2x4xf32>
    %c0_20 = arith.constant 0 : index
    %c0_21 = arith.constant 0 : index
    %35 = vector.load %arg4[%c0_20, %c0_21] : memref<2x4xf32, #tpu.memory_space<vmem>>, vector<2x4xf32>
    tpu.vector_store %arg4[%c0_20, %c0_21], %34 {strides = array<i32>} : memref<2x4xf32, #tpu.memory_space<vmem>>, vector<2x4xf32>,
    return
  }
  func.func @transform_0(%arg0: i32) -> (i32, i32) {
    %c0_i32 = arith.constant 0 : i32
    %c0_i32_0 = arith.constant 0 : i32
    %c0_i32_1 = arith.constant 0 : i32
    return %c0_i32, %c0_i32_0 : i32, i32
  }
  func.func @transform_1(%arg0: i32) -> (i32, i32) {
    %c0_i32 = arith.constant 0 : i32
    %c0_i32_0 = arith.constant 0 : i32
    %c0_i32_1 = arith.constant 0 : i32
    return %c0_i32, %c0_i32_0 : i32, i32
  }
  func.func @transform_2(%arg0: i32) -> (i32, i32) {
    %c0_i32 = arith.constant 0 : i32
    %c0_i32_0 = arith.constant 0 : i32
    %c0_i32_1 = arith.constant 0 : i32
    return %c0_i32, %c0_i32_0 : i32, i32
  }
  func.func @transform_3(%arg0: i32) -> (i32, i32) {
    %c0_i32 = arith.constant 0 : i32
    %c0_i32_0 = arith.constant 0 : i32
    %c0_i32_1 = arith.constant 0 : i32
    return %c0_i32, %c0_i32_0 : i32, i32
  }
}

</mosaic_0001>

<bundles_post_ra>
// kernel: tpu_custom_call.1
= control target key start
LH: loop header
LB: loop body
LE: loop exit
PB: predicated region body
PF: predicated region fallthrough
CT: control target
= control target key end

     0   :  { %vm53_vm0 = vcmask 523264   ;;  %s1271_s0 = inlined_call_operand.vmem [shape: bf16[64,64], index: 0, kind: input, shape index: {}]   ;;  %s1272_s1 = inlined_call_operand.vmem [shape: f32[64,4], index: 1, kind: input, shape index: {}]   ;;  %s1273_s2 = inlined_call_operand.vmem [shape: f32[112,32], index: 2, kind: input, shape index: {}]   ;;  %s1274_s3 = inlined_call_operand.hbm [shape: f32[2,4], index: 3, kind: output, shape index: {}]  }
   0x1   :  { %v31_v0 = vld [vmem:[%s1272_s1] sm:$0xff]  ;;  %v32_v1 = vld [vmem:[%s1272_s1 + $0x8] sm:$0xff]  ;;  %v33_v2 = vld [vmem:[%s1272_s1 + $0x10] sm:$0xff] }
   0x2   :  { %v996_v3 = vpack.c.bf16 %v32_v1, %v31_v0  ;;  %v34_v4 = vld [vmem:[%s1272_s1 + $0x18] sm:$0xff]  ;;  %v35_v6 = vld [vmem:[%s1272_s1 + $0x20] sm:$0xff]  ;;  %v36_v7 = vld [vmem:[%s1272_s1 + $0x28] sm:$0xff] }
   0x3   :  { %v1000_v5 = vpack.c.bf16 %v34_v4, %v33_v2  ;;  %v1117_v8 = vld [vmem:[%s1271_s0] sm:$0xff]  }
   0x4   :  { %997 = vmatprep.subr.bf16.mxu0 %v996_v3  ;;  %v820_v9 = vunpack.c.l.bf16 %v1117_v8 }
   0x5   :  { %999 = vmatpush3.bf16.msra.mxu0 %v996_v3 }
   0x6   :  { %8 = vsyncpa [#allocation3], 0  ;;  %1001 = vmatprep.subr.bf16.mxu0 %v1000_v5  ;;  %v1004_v10 = vpack.c.bf16 %v36_v7, %v35_v6  ;;  %911 = vmatprep.mubr.msk.f32.mxu0 %vm53_vm0, %v820_v9  ;;  %v37_v11 = vld [vmem:[%s1272_s1 + $0x30] sm:$0xff]  ;;  %v38_v12 = vld [vmem:[%s1272_s1 + $0x38] sm:$0xff]  ;;  %v821_v15 = vunpack.c.h.bf16 %v1117_v8  ;;  %vm212_vm1 = vcmask 1043456   ;;  %vm187_vm2 = vcmask 31744  }
   0x7   :  { %v1008_v13 = vpack.c.bf16 %v38_v12, %v37_v11  ;;  %v1130_v14 = vld [vmem:[%s1271_s0 + $0x8] sm:$0xff]   ;;  %v1137_v17 = vld [vmem:[%s1271_s0 + $0x10] sm:$0xff]   ;;  %v1150_v20 = vld [vmem:[%s1271_s0 + $0x18] sm:$0xff]   ;;  %vm438_vm3 = vcmask 261120   ;;  %vm1073_vm4 = vmmov 0   ;;  %vm655_vm5 = vcmask 130112  }
   0x8   :  { %v824_v16 = vunpack.c.l.bf16 %v1130_v14  ;;  %v825_v18 = vunpack.c.h.bf16 %v1130_v14  ;;  %v828_v19 = vunpack.c.l.bf16 %v1137_v17  ;;  %v829_v21 = vunpack.c.h.bf16 %v1137_v17  ;;  %v39_v24 = vld [vmem:[%s1273_s2] sm:$0xf]  ;;  %v41_v33 = vld [vmem:[%s1273_s2 + $0x10] sm:$0xff]  ;;  %v42_v34 = vld [vmem:[%s1273_s2 + $0x18] sm:$0xff]  ;;  %s1075_s0 = smov [#allocation2]  }
   0x9   :  { %1003 = vmatpush3.bf16.msra.mxu0 %v1000_v5  ;;  %v832_v22 = vunpack.c.l.bf16 %v1150_v20  ;;  %v833_v23 = vunpack.c.h.bf16 %v1150_v20  ;;  %923 = vmatprep.subr.msk.mxu1 %vm212_vm1, %v39_v24  ;;  %v43_v35 = vld [vmem:[%s1273_s2 + $0x20] sm:$0xff]  ;;  %v1028_v36 = vpack.c.bf16 %v42_v34, %v41_v33  ;;  %v44_v37 = vld [vmem:[%s1273_s2 + $0x28] sm:$0xff]  ;;  %vm662_vm6 = vcmask 195712   ;;  %s772_s8 = sshll.u32 %s1075_s0, 4  ;;  %s773_s8 = int_to_ptr.vmem [resolvable:$true] %s772_s8 }
   0xa   :  { %1005 = vmatprep.subr.bf16.mxu0 %v1004_v10  ;;  %924 = vmatpush3.msk.msra.mxu1 %vm212_vm1, %v39_v24  ;;  %v1032_v38 = vpack.c.bf16 %v44_v37, %v43_v35  ;;  %v788_v39 = vld [vmem:[%s1273_s2 + $0x8] ss:$0 sm:$0xff]  ;;  %v47_v12 = vld [vmem:[%s1273_s2 + $0x40] sm:$0x1]  ;;  %vm669_vm7 = vcmask 261312   ;;  %vm690_vm8 = vcmask 1041409   ;;  %p1053_p1 = scmp.lt.s32.totalorder %s773_s8, %s773_s8 }
   0xb   :  { %1042 = vpush %v47_v12  ;;  %vm764_vm9 = vcmask 25600   ;;  %s1048_s9 = scalar_lea.vmem %s773_s8, 32 }
   0xc   :  { %p1049_p0 = scmp.ne.s32.totalorder %s773_s8, %s1048_s9  ;;  %p1054_p2 = scmp.lt.s32.totalorder %s1048_s9, %s1048_s9 }
   0xd   :  { %1007 = vmatpush3.bf16.msra.mxu0 %v1004_v10 }
   0xe   :  { %1009 = vmatprep.subr.bf16.mxu0 %v1008_v13  ;;  %p1055_p3 = por %p1054_p2, %p1053_p1 }
  0x10   :  { %p1056_p4 = pnand %p1055_p3, %p1049_p0 }
  0x11   :  { %1011 = vmatpush3.bf16.msra.mxu0 %v1008_v13  ;;  %v806_v13 = vld [vmem:[%s1273_s2 + $0x30] ss:$0 sm:$0xff] }
  0x12   :  { %1029 = vmatprep.subr.bf16.mxu0 %v1028_v36 }
  0x14   :  { %912 = vmatmul.mubr.msk.f32.vlgmr.msra.gmra.mrb[0].mxu0 %vm53_vm0, %v821_v15 }
  0x15   :  { %914 = vmatprep.mubr.msk.f32.mxu0 %vm53_vm0, %v824_v16  ;;  %1031 = vmatpush3.bf16.msra.mxu0 %v1028_v36 }
  0x16   :  { %1033 = vmatprep.subr.bf16.mxu0 %v1032_v38 }
  0x18   :  { %915 = vmatmul.mubr.msk.f32.gmra.mrb[2].mxu0 %vm53_vm0, %v825_v18 }
  0x19   :  { %917 = vmatprep.mubr.msk.f32.mxu0 %vm53_vm0, %v828_v19  ;;  %1035 = vmatpush3.bf16.msra.mxu0 %v1032_v38 }
  0x1c   :  { %918 = vmatmul.mubr.msk.f32.gmra.mrb[4].mxu0 %vm53_vm0, %v829_v21 }
  0x1d   :  { %920 = vmatprep.mubr.msk.f32.mxu0 %vm53_vm0, %v832_v22 }
  0x20   :  { %921 = vmatmul.mubr.msk.f32.gmra.mrb[6].mxu0 %vm53_vm0, %v833_v23 }
  0x3c   :  { %s1043_s6 = spop %1042 }
  0xe7   :  { %v913_v25 = vpop.f32.mrb[0].mxu0 }
  0xe8   :  { %v144_v26 = vpop.f32.mrb[1].mxu0 }
  0xe9   :  { %925 = vmatprep.mubr.msk.f32.mxu1 %vm187_vm2, %v144_v26 }
  0xea   :  { %926 = vmatmul.mubr.msk.f32.vlgmr.msra.gmra.mrb[0].mxu1 %vm187_vm2, %v913_v25 }
  0xeb   :  { %v916_v27 = vpop.f32.mrb[2].mxu0 }
  0xec   :  { %v154_v28 = vpop.f32.mrb[3].mxu0 }
  0xed   :  { %928 = vmatprep.mubr.msk.f32.mxu1 %vm187_vm2, %v154_v28 }
  0xee   :  { %929 = vmatmul.mubr.msk.f32.gmra.mrb[2].mxu1 %vm187_vm2, %v916_v27 }
  0xef   :  { %v919_v29 = vpop.f32.mrb[4].mxu0 }
  0xf0   :  { %v164_v30 = vpop.f32.mrb[5].mxu0 }
  0xf1   :  { %931 = vmatprep.mubr.msk.f32.mxu1 %vm187_vm2, %v164_v30 }
  0xf2   :  { %932 = vmatmul.mubr.msk.f32.gmra.mrb[4].mxu1 %vm187_vm2, %v919_v29 }
  0xf3   :  { %v922_v31 = vpop.f32.mrb[6].mxu0 }
  0xf4   :  { %v174_v32 = vpop.f32.mrb[7].mxu0 }
  0xf5   :  { %934 = vmatprep.mubr.msk.f32.mxu1 %vm187_vm2, %v174_v32 }
  0xf6   :  { %935 = vmatmul.mubr.msk.f32.gmra.mrb[6].mxu1 %vm187_vm2, %v922_v31 }
  0xf7   :  { %953 = vmatprep.mubr.msk.f32.mxu1 %vm53_vm0, %v820_v9 }
 0x1bd   :  { %v927_v40 = vpop.f32.mrb[0].mxu1 }
 0x1be   :  { %v288_v41 = vadd.f32 %v927_v40, %v788_v39  ;;  %v282_v42 = vpop.f32.mrb[1].mxu1 }
 0x1bf   :  { %v283_v43 = vadd.f32 %v788_v39, %v282_v42 }
 0x1c0   :  { %v322_v44 = vmax.f32 %v288_v41, 0.0 }
 0x1c1   :  { %v321_v45 = vmax.f32 %v283_v43, 0.0  ;;  %v930_v46 = vpop.f32.mrb[2].mxu1 }
 0x1c2   :  { %v298_v47 = vadd.f32 %v930_v46, %v788_v39  ;;  %v292_v48 = vpop.f32.mrb[3].mxu1 }
 0x1c3   :  { %v1012_v49 = vpack.c.bf16 %v322_v44, %v321_v45  ;;  %v293_v50 = vadd.f32 %v788_v39, %v292_v48 }
 0x1c4   :  { %v324_v51 = vmax.f32 %v298_v47, 0.0 }
 0x1c5   :  { %v323_v52 = vmax.f32 %v293_v50, 0.0  ;;  %v933_v53 = vpop.f32.mrb[4].mxu1  ;;  %1013 = vmatprep.subr.bf16.mxu1 %v1012_v49 }
 0x1c6   :  { %v308_v54 = vadd.f32 %v933_v53, %v788_v39  ;;  %v302_v55 = vpop.f32.mrb[5].mxu1  ;;  %1015 = vmatpush3.bf16.msra.mxu1 %v1012_v49 }
 0x1c7   :  { %v1016_v56 = vpack.c.bf16 %v324_v51, %v323_v52  ;;  %v303_v57 = vadd.f32 %v788_v39, %v302_v55  ;;  %v48_v55 = vld [vmem:[%s1273_s2 + $0x48] sm:$0xff] }
 0x1c8   :  { %v326_v58 = vmax.f32 %v308_v54, 0.0 }
 0x1c9   :  { %v325_v59 = vmax.f32 %v303_v57, 0.0  ;;  %v936_v60 = vpop.f32.mrb[6].mxu1  ;;  %1017 = vmatprep.subr.bf16.mxu1 %v1016_v56  ;;  %v1072_v57 = vmov 0.0|0.0  }
 0x1ca   :  { %v318_v61 = vadd.f32 %v936_v60, %v788_v39  ;;  %v312_v62 = vpop.f32.mrb[7].mxu1  ;;  %1019 = vmatpush3.bf16.msra.mxu1 %v1016_v56  ;;  %v49_v56 = vld [vmem:[%s1273_s2 + $0x50] sm:$0xff]  ;;  %v51_v60 = vld [vmem:[%s1273_s2 + $0x60] sm:$0xff] }
 0x1cb   :  { %v1020_v63 = vpack.c.bf16 %v326_v58, %v325_v59  ;;  %v313_v0 = vadd.f32 %v788_v39, %v312_v62  ;;  %v1037_v58 = vpack.c.bf16 %v49_v56, %v48_v55  ;;  %v50_v59 = vld [vmem:[%s1273_s2 + $0x58] sm:$0xff]  ;;  %v1074_v62 = vmov 0.0  }
 0x1cc   :  { %v328_v1 = vmax.f32 %v318_v61, 0.0  ;;  %v1040_v61 = vpack.c.bf16 %v51_v60, %v50_v59 }
 0x1cd   :  { %v327_v2 = vmax.f32 %v313_v0, 0.0  ;;  %1021 = vmatprep.subr.bf16.mxu1 %v1020_v63 }
 0x1ce   :  { %1023 = vmatpush3.bf16.msra.mxu1 %v1020_v63 }
 0x1cf   :  { %v1024_v3 = vpack.c.bf16 %v328_v1, %v327_v2  ;;  %v644_v1 = vlaneseq }
 0x1d1   :  { %1025 = vmatprep.subr.bf16.mxu1 %v1024_v3 }
 0x1d2   :  { %1027 = vmatpush3.bf16.msra.mxu1 %v1024_v3 }
 0x1d3   :  { %1036 = vmatprep.subr.bf16.mxu1 %v1072_v57 }
 0x1d5   :  { %954 = vmatmul.mubr.msk.f32.vlgmr.msra.gmra.mrb[8].mxu1 %vm53_vm0, %v821_v15 }
 0x1d6   :  { %956 = vmatprep.mubr.msk.f32.mxu1 %vm53_vm0, %v824_v16  ;;  %1038 = vmatpush3.bf16.msra.mxu1 %v1037_v58 }
 0x1d7   :  { %1039 = vmatprep.subr.bf16.mxu1 %v1072_v57 }
 0x1d9   :  { %957 = vmatmul.mubr.msk.f32.gmra.mrb[10].mxu1 %vm53_vm0, %v825_v18  ;;  %v815_v18 = vld [vmem:[%s1273_s2 + $0x38] ss:$0 sm:$0xff] }
 0x1da   :  { %959 = vmatprep.mubr.msk.f32.mxu1 %vm53_vm0, %v828_v19  ;;  %1041 = vmatpush3.bf16.msra.mxu1 %v1040_v61 }
 0x1dd   :  { %960 = vmatmul.mubr.msk.f32.gmra.mrb[12].mxu1 %vm53_vm0, %v829_v21 }
 0x1de   :  { %962 = vmatprep.mubr.msk.f32.mxu1 %vm53_vm0, %v832_v22 }
 0x1e1   :  { %963 = vmatmul.mubr.msk.f32.gmra.mrb[14].mxu1 %vm53_vm0, %v833_v23 }
 0x1e2   :  { %993 = vmatprep.mubr.msk.f32.mxu1 %vm1073_vm4, %v1074_v62 }
 0x2a8   :  { %v955_v4 = vpop.f32.mrb[8].mxu1 }
 0x2a9   :  { %v395_v5 = vpop.f32.mrb[9].mxu1 }
 0x2aa   :  { %973 = vmatprep.mubr.msk.f32.mxu0 %vm438_vm3, %v395_v5  ;;  %v614_v5 = vstv %s1043_s6 }
 0x2ab   :  { %974 = vmatmul.mubr.msk.f32.vlgmr.msra.gmra.mrb[8].mxu0 %vm438_vm3, %v955_v4  ;;  %v645_v4 = vand.u32 127, %v644_v1 }
 0x2ac   :  { %v958_v6 = vpop.f32.mrb[10].mxu1 }
 0x2ad   :  { %v405_v7 = vpop.f32.mrb[11].mxu1  ;;  %v657_v12 = vadd.s32 4294967280, %v645_v4 }
 0x2ae   :  { %976 = vmatprep.mubr.msk.f32.mxu0 %vm438_vm3, %v405_v7 }
 0x2af   :  { %977 = vmatmul.mubr.msk.f32.gmra.mrb[10].mxu0 %vm438_vm3, %v958_v6 }
 0x2b0   :  { %v961_v8 = vpop.f32.mrb[12].mxu1 }
 0x2b1   :  { %v415_v9 = vpop.f32.mrb[13].mxu1 }
 0x2b2   :  { %979 = vmatprep.mubr.msk.f32.mxu0 %vm438_vm3, %v415_v9 }
 0x2b3   :  { %980 = vmatmul.mubr.msk.f32.gmra.mrb[12].mxu0 %vm438_vm3, %v961_v8  ;;  %v647_v8 = vshrl.u32 %v644_v1, 7 }
 0x2b4   :  { %v964_v10 = vpop.f32.mrb[14].mxu1 }
 0x2b5   :  { %v425_v11 = vpop.f32.mrb[15].mxu1 }
 0x2b6   :  { %982 = vmatprep.mubr.msk.f32.mxu0 %vm438_vm3, %v425_v11  ;;  %v650_v11 = vadd.s32 4294967288, %v645_v4 }
 0x2b7   :  { %983 = vmatmul.mubr.msk.f32.gmra.mrb[14].mxu0 %vm438_vm3, %v964_v10 }
 0x37e   :  { %v975_v14 = vpop.f32.mrb[8].mxu0 }
 0x37f   :  { %v535_v15 = vadd.f32 %v975_v14, %v806_v13  ;;  %v529_v16 = vpop.f32.mrb[9].mxu0  ;;  %v664_v14 = vadd.s32 4294967272, %v645_v4 }
 0x380   :  { %v530_v17 = vadd.f32 %v806_v13, %v529_v16 }
 0x381   :  { %v569_v19 = vmax.f32 %v535_v15, 0.0 }
 0x382   :  { %v568_v20 = vmax.f32 %v530_v17, 0.0  ;;  %v978_v21 = vpop.f32.mrb[10].mxu0 }
 0x383   :  { %v539_v22 = vpop.f32.mrb[11].mxu0  ;;  %v581_v23 = vmul.f32 %v815_v18, %v569_v19  ;;  %v545_v24 = vadd.f32 %v978_v21, %v806_v13  ;;  %v648_v19 = vsub.s32 %v645_v4, %v647_v8 }
 0x384   :  { %v540_v25 = vadd.f32 %v806_v13, %v539_v22  ;;  %v580_v27 = vmul.f32 %v815_v18, %v568_v20 }
 0x385   :  { %v591_v26 = vsel %vm438_vm3, %v581_v23, 0.0  ;;  %v571_v32 = vmax.f32 %v545_v24, 0.0  ;;  %v653_v23 = vsub.s32 %v650_v11, %v647_v8  ;;  %v660_v24 = vsub.s32 %v657_v12, %v647_v8 }
 0x386   :  { %v570_v28 = vmax.f32 %v540_v25, 0.0  ;;  %592 = vadd.xlane.f32.xlu0 %v591_v26  ;;  %v981_v29 = vpop.f32.mrb[12].mxu0  ;;  %v588_v35 = vsel %vm438_vm3, %v580_v27, 0.0  ;;  %v667_v26 = vsub.s32 %v664_v14, %v647_v8 }
 0x387   :  { %v555_v30 = vadd.f32 %v981_v29, %v806_v13  ;;  %v549_v31 = vpop.f32.mrb[13].mxu0  ;;  %v583_v42 = vmul.f32 %v815_v18, %v571_v32 }
 0x388   :  { %v550_v33 = vadd.f32 %v806_v13, %v549_v31  ;;  %v582_v36 = vmul.f32 %v815_v18, %v570_v28 }
 0x389   :  { %v573_v34 = vmax.f32 %v555_v30, 0.0  ;;  %v597_v49 = vsel %vm438_vm3, %v583_v42, 0.0 }
 0x38a   :  { %v572_v37 = vmax.f32 %v550_v33, 0.0  ;;  %589 = vadd.xlane.f32.xlu0 %v588_v35  ;;  %v984_v38 = vpop.f32.mrb[14].mxu0  ;;  %v594_v44 = vsel %vm438_vm3, %v582_v36, 0.0 }
 0x38b   :  { %v559_v39 = vpop.f32.mrb[15].mxu0  ;;  %v585_v40 = vmul.f32 %v815_v18, %v573_v34  ;;  %v565_v43 = vadd.f32 %v984_v38, %v806_v13 }
 0x38c   :  { %v560_v41 = vadd.f32 %v806_v13, %v559_v39  ;;  %v584_v46 = vmul.f32 %v815_v18, %v572_v37 }
 0x38d   :  { %v603_v45 = vsel %vm438_vm3, %v585_v40, 0.0  ;;  %v575_v48 = vmax.f32 %v565_v43, 0.0 }
 0x38e   :  { %v574_v47 = vmax.f32 %v560_v41, 0.0  ;;  %595 = vadd.xlane.f32.xlu0 %v594_v44  ;;  %604 = vadd.xlane.f32.xlu1 %v603_v45  ;;  %v600_v50 = vsel %vm438_vm3, %v584_v46, 0.0 }
 0x38f   :  { %v587_v53 = vmul.f32 %v815_v18, %v575_v48 }
 0x390   :  { %v586_v51 = vmul.f32 %v815_v18, %v574_v47 }
 0x391   :  { %v609_v54 = vsel %vm438_vm3, %v587_v53, 0.0 }
 0x392   :  { %598 = vadd.xlane.f32.xlu0 %v597_v49  ;;  %601 = vadd.xlane.f32.xlu1 %v600_v50  ;;  %v606_v52 = vsel %vm438_vm3, %v586_v51, 0.0  ;;  %v816_v49 = vld [vmem:[%s1273_s2 + $0x68] ss:$0 sm:$0xff] }
 0x396   :  { %607 = vadd.xlane.f32.xlu1 %v606_v52 }
 0x39a   :  { %610 = vadd.xlane.f32.xlu1 %v609_v54 }
 0x413   :  { %v593_v63 = vpop.xlane.xlu0 %592 }
 0x414   :  { %v617_v15 = vadd.f32 %v614_v5, %v593_v63 }
 0x416   :  { %v625_v27 = vmax.f32 %v617_v15, 0.0 }
 0x417   :  { %v590_v0 = vpop.xlane.xlu0 %589 }
 0x418   :  { %v616_v9 = vadd.f32 %v614_v5, %v590_v0  ;;  %v654_v37 = vrot.slane %v625_v27, %v653_v23 }
 0x41a   :  { %v624_v20 = vmax.f32 %v616_v9, 0.0 }
 0x41b   :  { %v596_v2 = vpop.xlane.xlu0 %595  ;;  %v605_v3 = vpop.xlane.xlu1 %604 }
 0x41c   :  { %v618_v13 = vadd.f32 %v614_v5, %v596_v2  ;;  %v621_v16 = vadd.f32 %v614_v5, %v605_v3  ;;  %v649_v32 = vrot.slane %v624_v20, %v648_v19 }
 0x41e   :  { %v626_v25 = vmax.f32 %v618_v13, 0.0  ;;  %v629_v28 = vmax.f32 %v621_v16, 0.0  ;;  %v656_v41 = vsel %vm655_vm5, %v654_v37, %v649_v32 }
 0x41f   :  { %v599_v6 = vpop.xlane.xlu0 %598  ;;  %v602_v7 = vpop.xlane.xlu1 %601 }
 0x420   :  { %v620_v10 = vadd.f32 %v614_v5, %v602_v7  ;;  %v619_v17 = vadd.f32 %v614_v5, %v599_v6  ;;  %v661_v35 = vrot.slane %v626_v25, %v660_v24  ;;  %v678_v38 = vrot.slane %v629_v28, %v653_v23 }
 0x422   :  { %v628_v21 = vmax.f32 %v620_v10, 0.0  ;;  %v627_v29 = vmax.f32 %v619_v17, 0.0  ;;  %v663_v44 = vsel %vm662_vm6, %v661_v35, %v656_v41 }
 0x423   :  { %v608_v18 = vpop.xlane.xlu1 %607 }
 0x424   :  { %v622_v22 = vadd.f32 %v614_v5, %v608_v18  ;;  %v674_v33 = vrot.slane %v628_v21, %v648_v19  ;;  %v668_v39 = vrot.slane %v627_v29, %v667_v26 }
 0x426   :  { %v630_v30 = vmax.f32 %v622_v22, 0.0  ;;  %v679_v42 = vsel %vm655_vm5, %v678_v38, %v674_v33  ;;  %v670_v46 = vsel %vm669_vm7, %v668_v39, %v663_v44 }
 0x427   :  { %v611_v31 = vpop.xlane.xlu1 %610 }
 0x428   :  { %v623_v34 = vadd.f32 %v614_v5, %v611_v31  ;;  %v683_v36 = vrot.slane %v630_v30, %v660_v24 }
 0x42a   :  { %v631_v40 = vmax.f32 %v623_v34, 0.0  ;;  %v684_v45 = vsel %vm662_vm6, %v683_v36, %v679_v42 }
 0x42c   :  { %v688_v43 = vrot.slane %v631_v40, %v667_v26 }
 0x42e   :  { %v689_v47 = vsel %vm669_vm7, %v688_v43, %v684_v45 }
 0x42f   :  { %v691_v48 = vsel %vm690_vm8, %v689_v47, %v670_v46 }
 0x430   :  { %994 = vmatmul.mubr.msk.f32.vlgmr.msra.gmra.mrb[16].mxu1 %vm438_vm3, %v691_v48 }
 0x503   :  { %v760_v50 = vpop.f32.mrb[16].mxu1 }
 0x504   :  { %v761_v51 = vadd.f32 %v816_v49, %v760_v50  ;;  %v995_v52 = vpop.f32.mrb[17].mxu1 }
 0x506   :  { %765 = vst.msk [vmem:[#allocation2] sm:$0x3] %vm764_vm9, %v761_v51 }
 0x507   :  { %1059 = shalt.err (!%p1056_p4)
}
 0x508   :  { %s1060_s12 = scalar_lea.hbm %s1274_s3, 32 }
 0x509   :  { %p1061_p5 = scmp.ne.s32.totalorder %s1274_s3, %s1060_s12  ;;  %p1064_p6 = scmp.lt.u32.totalorder %s1060_s12, %s1274_s3 }
 0x50b   :  { %p1066_p7 = pnand %p1064_p6, %p1061_p5 }
 0x50d   :  { %1069 = shalt.err (!%p1066_p7)
}
 0x50e   :  { %775 = dma.vmem_to_hbm [thread:$0]  %s773_s8, 32, %s1274_s3, [#allocation3]  }
 0x50f   :  { %1070 = dma.done.wait [#allocation3], 32  }
 0x510   :  { %1071 = vsyncadd [#allocation3], 4294967264 }
 0x511   :  { %779 = vsyncpa [#allocation3], 1 }

</bundles_post_ra>
